<compile_context>
chip_gen: v7x
topology: tpu7x:2x2x1
jax: 0.10.0
libtpu: 0.0.40
codegen_flags: <defaults>
</compile_context>

<pallas_src>
import jax
import jax.numpy as jnp
from jax.experimental import pallas as pl
from jax.experimental.pallas import tpu as pltpu


def _elu(z):
    # ELU, alpha=1.0 (PyTorch default). exp only sees non-positive values.
    return jnp.where(z > 0, z, jnp.exp(jnp.minimum(z, 0.0)) - 1.0)


def _round_up(n, m):
    return (n + m - 1) // m * m


# ----------------------------------------------------------------------------
# Kernel: one batch tile, all 4 branches fused via packed / block-diag weights
# ----------------------------------------------------------------------------
def tarnet_fused_kernel(x_ref, w1_ref, b1_ref, w2_ref, b2_ref, w3_ref, b3_ref,
                        out_ref):
    cdt = w1_ref.dtype                                    # compute dtype (bf16 or f32)
    x = x_ref[...].astype(cdt)                            # [bt, input_dim]
    h = _elu(jnp.dot(x, w1_ref[...],
                     preferred_element_type=jnp.float32) + b1_ref[...])
    h = _elu(jnp.dot(h.astype(cdt), w2_ref[...],
                     preferred_element_type=jnp.float32) + b2_ref[...])
    y = jnp.dot(h.astype(cdt), w3_ref[...],
                preferred_element_type=jnp.float32) + b3_ref[...]
    out_ref[...] = y.astype(out_ref.dtype)                # [bt, 4*lat] lane-dense


# ----------------------------------------------------------------------------
# Parameter packing — call ONCE at init / param-update time, not per forward.
# ----------------------------------------------------------------------------
def _block_diag(mats):
    n = len(mats)
    r, c = mats[0].shape
    out = jnp.zeros((n * r, n * c), mats[0].dtype)
    for i, m in enumerate(mats):
        out = out.at[i * r:(i + 1) * r, i * c:(i + 1) * c].set(m)
    return out


def pack_tarnet_params(params, compute_dtype=jnp.bfloat16):
    """Pack stacked per-branch params into the fused lane-dense layout.

    params (branch-stacked, weights stored [in, out]):
      w1: [4, in, lat]  b1: [4, lat]
      w2: [4, lat, lat] b2: [4, lat]
      w3: [4, lat, lat] b3: [4, lat]
    Returns a dict of packed tensors: weights in `compute_dtype`, biases f32.
    """
    n, in_dim, lat = params["w1"].shape
    w1p = jnp.transpose(params["w1"], (1, 0, 2)).reshape(in_dim, n * lat)
    w2p = _block_diag([params["w2"][b] for b in range(n)])
    w3p = _block_diag([params["w3"][b] for b in range(n)])
    return {
        "w1": w1p.astype(compute_dtype),
        "b1": params["b1"].reshape(1, n * lat).astype(jnp.float32),
        "w2": w2p.astype(compute_dtype),
        "b2": params["b2"].reshape(1, n * lat).astype(jnp.float32),
        "w3": w3p.astype(compute_dtype),
        "b3": params["b3"].reshape(1, n * lat).astype(jnp.float32),
        "n_branch": n,
        "lat": lat,
        "input_dim": in_dim,
    }


# ----------------------------------------------------------------------------
# Forward
# ----------------------------------------------------------------------------
def tarnet_forward(x, packed, *, out_dtype=jnp.float32, use_pallas=None,
                   small_batch_threshold=256):
    """x: [B, input_dim] f32.  packed: output of pack_tarnet_params (hoisted).
    Returns (phi_gamma, phi_delta, phi_upsilon, phi_irr), each [B, lat]."""
    B, input_dim = x.shape
    n_branch, lat = packed["n_branch"], packed["lat"]
    d_out = n_branch * lat
    w1p, b1p = packed["w1"], packed["b1"]
    w2p, b2p = packed["w2"], packed["b2"]
    w3p, b3p = packed["w3"], packed["b3"]

    if use_pallas is None:
        use_pallas = B >= small_batch_threshold

    if not use_pallas:
        # Small-batch fast path: a single pallas_call here is pure fixed cost
        # (dispatch + DMA prologue/epilogue); XLA fusion matches or beats it.
        cdt = w1p.dtype
        h = _elu(jnp.dot(x.astype(cdt), w1p,
                         preferred_element_type=jnp.float32) + b1p)
        h = _elu(jnp.dot(h.astype(cdt), w2p,
                         preferred_element_type=jnp.float32) + b2p)
        y = (jnp.dot(h.astype(cdt), w3p,
                     preferred_element_type=jnp.float32) + b3p).astype(out_dtype)
        return tuple(y[:, b * lat:(b + 1) * lat] for b in range(n_branch))

    # ---- pad/tile policy: pad to a multiple of 512 (8 for tiny B), pick bt
    # from {512, 1024, 2048} dividing pB, preferring >=2 grid steps. --------
    if B <= 512:
        pB = _round_up(B, 8)
        bt = pB
    else:
        pB = _round_up(B, 512)
        bt = 512
        for cand in (2048, 1024):
            if pB % cand == 0 and pB // cand >= 2:
                bt = cand
                break
    xp = x if pB == B else jnp.pad(x, ((0, pB - B), (0, 0)))
    n_tiles = pB // bt

    # ---- grid-axis semantics: engage both TensorCores on v7x when there are
    # >=2 batch tiles; single-TC chips keep plain parallel/arbitrary. -------
    if n_tiles >= 2:
        kind = jax.devices()[0].device_kind.lower()
        if "v7" in kind or "7x" in kind:
            dim_sem = (pltpu.CORE_PARALLEL,)
        else:
            dim_sem = ("parallel",)
    else:
        dim_sem = ("arbitrary",)

    out = pl.pallas_call(
        tarnet_fused_kernel,
        out_shape=jax.ShapeDtypeStruct((pB, d_out), out_dtype),
        grid_spec=pltpu.PrefetchScalarGridSpec(
            num_scalar_prefetch=0,
            grid=(n_tiles,),
            in_specs=[
                # x: one batch tile per grid step
                pl.BlockSpec((bt, input_dim), lambda i: (i, 0)),
                # packed weights / biases: resident (constant index_map, so
                # they are fetched once and never re-DMA'd across tiles)
                pl.BlockSpec((input_dim, d_out), lambda i: (0, 0)),
                pl.BlockSpec((1, d_out), lambda i: (0, 0)),
                pl.BlockSpec((d_out, d_out), lambda i: (0, 0)),
                pl.BlockSpec((1, d_out), lambda i: (0, 0)),
                pl.BlockSpec((d_out, d_out), lambda i: (0, 0)),
                pl.BlockSpec((1, d_out), lambda i: (0, 0)),
            ],
            out_specs=pl.BlockSpec((bt, d_out), lambda i: (i, 0)),
        ),
        compiler_params=pltpu.CompilerParams(dimension_semantics=dim_sem),
    )(xp, w1p, b1p, w2p, b2p, w3p, b3p)

    out = out[:B]
    return tuple(out[:, b * lat:(b + 1) * lat] for b in range(n_branch))


# ----------------------------------------------------------------------------
# Init + pure-JAX reference
# ----------------------------------------------------------------------------
def init_tarnet_params(key, input_dim, lat_dim_enc, n_branch=4):
    """Deterministic synthetic init. Weights stored [in, out] (transposed
    relative to PyTorch nn.Linear's [out, in])."""
    ks = jax.random.split(key, 6)
    s1 = 1.0 / jnp.sqrt(input_dim)
    s2 = 1.0 / jnp.sqrt(lat_dim_enc)
    return {
        "w1": jax.random.uniform(ks[0], (n_branch, input_dim, lat_dim_enc),
                                 jnp.float32, -s1, s1),
        "b1": jax.random.uniform(ks[1], (n_branch, lat_dim_enc),
                                 jnp.float32, -s1, s1),
        "w2": jax.random.uniform(ks[2], (n_branch, lat_dim_enc, lat_dim_enc),
                                 jnp.float32, -s2, s2),
        "b2": jax.random.uniform(ks[3], (n_branch, lat_dim_enc),
                                 jnp.float32, -s2, s2),
        "w3": jax.random.uniform(ks[4], (n_branch, lat_dim_enc, lat_dim_enc),
                                 jnp.float32, -s2, s2),
        "b3": jax.random.uniform(ks[5], (n_branch, lat_dim_enc),
                                 jnp.float32, -s2, s2),
    }


def tarnet_reference(x, params):
    """Pure-JAX reference mirroring the PyTorch forward (4 separate MLPs)."""
    hi = jax.lax.Precision.HIGHEST
    outs = []
    for b in range(params["w1"].shape[0]):
        h = _elu(jnp.dot(x, params["w1"][b], precision=hi) + params["b1"][b])
        h = _elu(jnp.dot(h, params["w2"][b], precision=hi) + params["b2"][b])
        outs.append(jnp.dot(h, params["w3"][b], precision=hi) + params["b3"][b])
    return tuple(outs)


if __name__ == "__main__":
    key = jax.random.PRNGKey(0)
    k_x1, k_x2, k_p = jax.random.split(key, 3)

    B_small, B_large, input_dim, lat_dim_enc = 8, 640, 16, 32
    x_small = jax.random.normal(k_x1, (B_small, input_dim), dtype=jnp.float32)
    x_large = jax.random.normal(k_x2, (B_large, input_dim), dtype=jnp.float32)
    params = init_tarnet_params(k_p, input_dim, lat_dim_enc)

    # Pack ONCE (hoisted out of the forward path, per perf review).
    packed_f32 = pack_tarnet_params(params, compute_dtype=jnp.float32)
    packed_bf16 = pack_tarnet_params(params, compute_dtype=jnp.bfloat16)

    refs_small = tarnet_reference(x_small, params)
    refs_large = tarnet_reference(x_large, params)

    # 1) Exactness of the fused kernel + packing (f32 operands, forced Pallas,
    #    single batch tile).
    outs = jax.block_until_ready(
        tarnet_forward(x_small, packed_f32, use_pallas=True))
    for o, r in zip(outs, refs_small):
        assert o.shape == (B_small, lat_dim_enc)
        assert jnp.allclose(o, r, atol=2e-3, rtol=2e-3)

    # 2) Production path: bf16 operands, padded/tiled batch (pB=1024, bt=512,
    #    2 grid steps), auto dispatch.
    outs = jax.block_until_ready(tarnet_forward(x_large, packed_bf16))
    for o, r in zip(outs, refs_large):
        assert o.shape == (B_large, lat_dim_enc)
        assert jnp.allclose(o, r, atol=5e-2, rtol=5e-2)

    # 3) Small-batch fast path (auto: skips Pallas below the threshold).
    outs = jax.block_until_ready(tarnet_forward(x_small, packed_f32))
    for o, r in zip(outs, refs_small):
        assert jnp.allclose(o, r, atol=2e-3, rtol=2e-3)

    print("KERNEL_OK")
</pallas_src>

<mosaic_0001>
module attributes {stable_mosaic.version = 11 : i64} {
  func.func @tarnet_fused_kernel(%arg0: i32, %arg1: memref<8x16xf32, #tpu.memory_space<vmem>>, %arg2: memref<16x128xf32, #tpu.memory_space<vmem>>, %arg3: memref<1x128xf32, #tpu.memory_space<vmem>>, %arg4: memref<128x128xf32, #tpu.memory_space<vmem>>, %arg5: memref<1x128xf32, #tpu.memory_space<vmem>>, %arg6: memref<128x128xf32, #tpu.memory_space<vmem>>, %arg7: memref<1x128xf32, #tpu.memory_space<vmem>>, %arg8: memref<8x128xf32, #tpu.memory_space<vmem>>) attributes {dimension_semantics = [#tpu.dimension_semantics<arbitrary>], iteration_bounds = array<i64: 1>, scalar_prefetch = 0 : i64, scratch_operands = 0 : i64, tpu.core_type = #tpu.core_type<tc>, window_params = [{transform_indices = @transform_0, window_bounds = array<i64: 8, 16>}, {pipeline_mode = #tpu.pipeline_mode<synchronous>, transform_indices = @transform_1, window_bounds = array<i64: 16, 128>}, {pipeline_mode = #tpu.pipeline_mode<synchronous>, transform_indices = @transform_2, window_bounds = array<i64: 1, 128>}, {pipeline_mode = #tpu.pipeline_mode<synchronous>, transform_indices = @transform_3, window_bounds = array<i64: 128, 128>}, {pipeline_mode = #tpu.pipeline_mode<synchronous>, transform_indices = @transform_4, window_bounds = array<i64: 1, 128>}, {pipeline_mode = #tpu.pipeline_mode<synchronous>, transform_indices = @transform_5, window_bounds = array<i64: 128, 128>}, {pipeline_mode = #tpu.pipeline_mode<synchronous>, transform_indices = @transform_6, window_bounds = array<i64: 1, 128>}, {transform_indices = @transform_7, window_bounds = array<i64: 8, 128>}]} {
    %c0 = arith.constant 0 : index
    %c0_0 = arith.constant 0 : index
    %0 = vector.load %arg1[%c0, %c0_0] : memref<8x16xf32, #tpu.memory_space<vmem>>, vector<8x16xf32>
    %c0_1 = arith.constant 0 : index
    %c0_2 = arith.constant 0 : index
    %1 = vector.load %arg2[%c0_1, %c0_2] : memref<16x128xf32, #tpu.memory_space<vmem>>, vector<16x128xf32>
    %cst = arith.constant dense<0.000000e+00> : vector<8x128xf32>
    %2 = tpu.matmul %0, %1, %cst {dimension_numbers = #tpu.dot_dimension_numbers<[1], [0], [0], [1], [0, 0, 1, 1], [], []>} : vector<8x16xf32>, vector<16x128xf32>, vector<8x128xf32> -> vector<8x128xf32>
    %c0_3 = arith.constant 0 : index
    %c0_4 = arith.constant 0 : index
    %3 = vector.load %arg3[%c0_3, %c0_4] : memref<1x128xf32, #tpu.memory_space<vmem>>, vector<1x128xf32>
    %4 = vector.broadcast %3 : vector<1x128xf32> to vector<8x128xf32>
    %5 = arith.addf %2, %4 : vector<8x128xf32>
    %cst_5 = arith.constant 0.000000e+00 : f32
    %6 = vector.broadcast %cst_5 : f32 to vector<8x128xf32>
    %7 = arith.cmpf ogt, %5, %6 : vector<8x128xf32>
    %cst_6 = arith.constant 0.000000e+00 : f32
    %8 = vector.broadcast %cst_6 : f32 to vector<8x128xf32>
    %9 = arith.minimumf %5, %8 : vector<8x128xf32>
    %10 = math.exp %9 : vector<8x128xf32>
    %cst_7 = arith.constant 1.000000e+00 : f32
    %11 = vector.broadcast %cst_7 : f32 to vector<8x128xf32>
    %12 = arith.subf %10, %11 : vector<8x128xf32>
    %13 = arith.select %7, %5, %12 : vector<8x128xi1>, vector<8x128xf32>
    %c0_8 = arith.constant 0 : index
    %c0_9 = arith.constant 0 : index
    %14 = vector.load %arg4[%c0_8, %c0_9] : memref<128x128xf32, #tpu.memory_space<vmem>>, vector<128x128xf32>
    %cst_10 = arith.constant dense<0.000000e+00> : vector<8x128xf32>
    %15 = tpu.matmul %13, %14, %cst_10 {dimension_numbers = #tpu.dot_dimension_numbers<[1], [0], [0], [1], [0, 0, 1, 1], [], []>} : vector<8x128xf32>, vector<128x128xf32>, vector<8x128xf32> -> vector<8x128xf32>
    %c0_11 = arith.constant 0 : index
    %c0_12 = arith.constant 0 : index
    %16 = vector.load %arg5[%c0_11, %c0_12] : memref<1x128xf32, #tpu.memory_space<vmem>>, vector<1x128xf32>
    %17 = vector.broadcast %16 : vector<1x128xf32> to vector<8x128xf32>
    %18 = arith.addf %15, %17 : vector<8x128xf32>
    %cst_13 = arith.constant 0.000000e+00 : f32
    %19 = vector.broadcast %cst_13 : f32 to vector<8x128xf32>
    %20 = arith.cmpf ogt, %18, %19 : vector<8x128xf32>
    %cst_14 = arith.constant 0.000000e+00 : f32
    %21 = vector.broadcast %cst_14 : f32 to vector<8x128xf32>
    %22 = arith.minimumf %18, %21 : vector<8x128xf32>
    %23 = math.exp %22 : vector<8x128xf32>
    %cst_15 = arith.constant 1.000000e+00 : f32
    %24 = vector.broadcast %cst_15 : f32 to vector<8x128xf32>
    %25 = arith.subf %23, %24 : vector<8x128xf32>
    %26 = arith.select %20, %18, %25 : vector<8x128xi1>, vector<8x128xf32>
    %c0_16 = arith.constant 0 : index
    %c0_17 = arith.constant 0 : index
    %27 = vector.load %arg6[%c0_16, %c0_17] : memref<128x128xf32, #tpu.memory_space<vmem>>, vector<128x128xf32>
    %cst_18 = arith.constant dense<0.000000e+00> : vector<8x128xf32>
    %28 = tpu.matmul %26, %27, %cst_18 {dimension_numbers = #tpu.dot_dimension_numbers<[1], [0], [0], [1], [0, 0, 1, 1], [], []>} : vector<8x128xf32>, vector<128x128xf32>, vector<8x128xf32> -> vector<8x128xf32>
    %c0_19 = arith.constant 0 : index
    %c0_20 = arith.constant 0 : index
    %29 = vector.load %arg7[%c0_19, %c0_20] : memref<1x128xf32, #tpu.memory_space<vmem>>, vector<1x128xf32>
    %30 = vector.broadcast %29 : vector<1x128xf32> to vector<8x128xf32>
    %31 = arith.addf %28, %30 : vector<8x128xf32>
    %c0_21 = arith.constant 0 : index
    %c0_22 = arith.constant 0 : index
    %32 = vector.load %arg8[%c0_21, %c0_22] : memref<8x128xf32, #tpu.memory_space<vmem>>, vector<8x128xf32>
    tpu.vector_store %arg8[%c0_21, %c0_22], %31 {strides = array<i32>} : memref<8x128xf32, #tpu.memory_space<vmem>>, vector<8x128xf32>,
    return
  }
  func.func @transform_0(%arg0: i32) -> (i32, i32) {
    %c0_i32 = arith.constant 0 : i32
    %c0_i32_0 = arith.constant 0 : i32
    return %arg0, %c0_i32 : i32, i32
  }
  func.func @transform_1(%arg0: i32) -> (i32, i32) {
    %c0_i32 = arith.constant 0 : i32
    %c0_i32_0 = arith.constant 0 : i32
    %c0_i32_1 = arith.constant 0 : i32
    return %c0_i32, %c0_i32_0 : i32, i32
  }
  func.func @transform_2(%arg0: i32) -> (i32, i32) {
    %c0_i32 = arith.constant 0 : i32
    %c0_i32_0 = arith.constant 0 : i32
    %c0_i32_1 = arith.constant 0 : i32
    return %c0_i32, %c0_i32_0 : i32, i32
  }
  func.func @transform_3(%arg0: i32) -> (i32, i32) {
    %c0_i32 = arith.constant 0 : i32
    %c0_i32_0 = arith.constant 0 : i32
    %c0_i32_1 = arith.constant 0 : i32
    return %c0_i32, %c0_i32_0 : i32, i32
  }
  func.func @transform_4(%arg0: i32) -> (i32, i32) {
    %c0_i32 = arith.constant 0 : i32
    %c0_i32_0 = arith.constant 0 : i32
    %c0_i32_1 = arith.constant 0 : i32
    return %c0_i32, %c0_i32_0 : i32, i32
  }
  func.func @transform_5(%arg0: i32) -> (i32, i32) {
    %c0_i32 = arith.constant 0 : i32
    %c0_i32_0 = arith.constant 0 : i32
    %c0_i32_1 = arith.constant 0 : i32
    return %c0_i32, %c0_i32_0 : i32, i32
  }
  func.func @transform_6(%arg0: i32) -> (i32, i32) {
    %c0_i32 = arith.constant 0 : i32
    %c0_i32_0 = arith.constant 0 : i32
    %c0_i32_1 = arith.constant 0 : i32
    return %c0_i32, %c0_i32_0 : i32, i32
  }
  func.func @transform_7(%arg0: i32) -> (i32, i32) {
    %c0_i32 = arith.constant 0 : i32
    %c0_i32_0 = arith.constant 0 : i32
    return %arg0, %c0_i32 : i32, i32
  }
}

</mosaic_0001>

<bundles_post_ra>
// kernel: tpu_custom_call.1
= control target key start
LH: loop header
LB: loop body
LE: loop exit
PB: predicated region body
PF: predicated region fallthrough
CT: control target
= control target key end

     0   :  { %12 = vsyncpa [#allocation3], 0  ;;  %s831_s0 = inlined_call_operand.hbm [shape: f32[8,16], index: 0, kind: input, shape index: {}]   ;;  %s832_s1 = inlined_call_operand.hbm [shape: f32[16,128], index: 1, kind: input, shape index: {}]   ;;  %s833_s2 = inlined_call_operand.vmem [shape: f32[1,128], index: 2, kind: input, shape index: {}]   ;;  %s834_s3 = inlined_call_operand.hbm [shape: f32[128,128], index: 3, kind: input, shape index: {}]   ;;  %s835_s4 = inlined_call_operand.vmem [shape: f32[1,128], index: 4, kind: input, shape index: {}]   ;;  %s836_s5 = inlined_call_operand.hbm [shape: f32[128,128], index: 5, kind: input, shape index: {}]   ;;  %s837_s6 = inlined_call_operand.vmem [shape: f32[1,128], index: 6, kind: input, shape index: {}]   ;;  %s838_s7 = inlined_call_operand.hbm [shape: f32[8,128], index: 7, kind: output, shape index: {}]  }
   0x1   :  { %13 = vsyncpa [#allocation6], 0 }
   0x2   :  { %14 = vsyncpa [#allocation9], 0 }
   0x3   :  { %15 = vsyncpa [#allocation4], 0  ;;  %s683_s24 = smov [#allocation5]   ;;  %s565_s28 = scalar_lea.hbm %s832_s1, 256 }
   0x4   :  { %s31_s25 = sshll.u32 %s683_s24, 4  ;;  %p566_p0 = scmp.ne.s32.totalorder %s832_s1, %s565_s28  ;;  %s32_s25 = int_to_ptr.vmem [resolvable:$true] %s31_s25 }
   0x5   :  { %p569_p1 = scmp.lt.u32.totalorder %s565_s28, %s832_s1 }
   0x7   :  { %p571_p2 = pnand %p569_p1, %p566_p0 }
   0x9   :  { %574 = shalt.err (!%p571_p2)
}
   0xa   :  { %s575_s10 = scalar_lea.vmem %s32_s25, 256  ;;  %p580_p4 = scmp.lt.s32.totalorder %s32_s25, %s32_s25 }
   0xb   :  { %p576_p3 = scmp.ne.s32.totalorder %s32_s25, %s575_s10  ;;  %p581_p5 = scmp.lt.s32.totalorder %s575_s10, %s575_s10 }
   0xd   :  { %p582_p6 = por %p581_p5, %p580_p4 }
   0xf   :  { %p583_p7 = pnand %p582_p6, %p576_p3 }
  0x11   :  { %586 = shalt.err (!%p583_p7)
}
  0x12   :  { %s684_s11 = smov 128   ;;  %s685_s12 = smov 8  }
  0x13   :  { %37 = dma.hbm_to_vmem [thread:$0]  %s832_s1, 256, %s32_s25, [#allocation6], %s684_s11, %s684_s11, %s685_s12  }
  0x14   :  { %s686_s15 = smov [#allocation2]   ;;  %s687_s17 = smov [#allocation7]  }
  0x15   :  { %s22_s16 = sshll.u32 %s686_s15, 4  ;;  %s45_s18 = sshll.u32 %s687_s17, 4  ;;  %s23_s16 = int_to_ptr.vmem [resolvable:$true] %s22_s16  ;;  %s46_s18 = int_to_ptr.vmem [resolvable:$true] %s45_s18 }
  0x16   :  { %s587_s21 = scalar_lea.hbm %s831_s0, 128 }
  0x17   :  { %p588_p8 = scmp.ne.s32.totalorder %s831_s0, %s587_s21  ;;  %p591_p9 = scmp.lt.u32.totalorder %s587_s21, %s831_s0 }
  0x19   :  { %p593_p10 = pnand %p591_p9, %p588_p8 }
  0x1b   :  { %596 = shalt.err (!%p593_p10)
}
  0x1c   :  { %s597_s1 = scalar_lea.vmem %s23_s16, 128  ;;  %p602_p12 = scmp.lt.s32.totalorder %s23_s16, %s23_s16 }
  0x1d   :  { %p598_p11 = scmp.ne.s32.totalorder %s23_s16, %s597_s1  ;;  %p603_p13 = scmp.lt.s32.totalorder %s597_s1, %s597_s1 }
  0x1f   :  { %p604_p0 = por %p603_p13, %p602_p12 }
  0x21   :  { %p605_p1 = pnand %p604_p0, %p598_p11 }
  0x23   :  { %608 = shalt.err (!%p605_p1)
}
  0x24   :  { %25 = dma.hbm_to_vmem [thread:$0]  %s831_s0, 128, %s23_s16, [#allocation3]  }
  0x25   :  { %s609_s30 = scalar_lea.hbm %s834_s3, 2048 }
  0x26   :  { %p610_p2 = scmp.ne.s32.totalorder %s834_s3, %s609_s30  ;;  %p613_p3 = scmp.lt.u32.totalorder %s609_s30, %s834_s3 }
  0x28   :  { %p615_p4 = pnand %p613_p3, %p610_p2 }
  0x2a   :  { %618 = shalt.err (!%p615_p4)
}
  0x2b   :  { %s619_s14 = scalar_lea.vmem %s46_s18, 2048  ;;  %p624_p6 = scmp.lt.s32.totalorder %s46_s18, %s46_s18 }
  0x2c   :  { %p620_p5 = scmp.ne.s32.totalorder %s46_s18, %s619_s14  ;;  %p625_p7 = scmp.lt.s32.totalorder %s619_s14, %s619_s14 }
  0x2e   :  { %p626_p8 = por %p625_p7, %p624_p6 }
  0x30   :  { %p627_p9 = pnand %p626_p8, %p620_p5 }
  0x32   :  { %630 = shalt.err (!%p627_p9)
}
  0x33   :  { %51 = dma.hbm_to_vmem [thread:$0]  %s834_s3, 2048, %s46_s18, [#allocation6], %s684_s11, %s684_s11, %s685_s12  }
  0x34   :  { %s688_s16 = smov [#allocation8]   ;;  %s631_s21 = scalar_lea.hbm %s836_s5, 2048 }
  0x35   :  { %s59_s17 = sshll.u32 %s688_s16, 4  ;;  %p632_p10 = scmp.ne.s32.totalorder %s836_s5, %s631_s21  ;;  %s60_s17 = int_to_ptr.vmem [resolvable:$true] %s59_s17 }
  0x36   :  { %p635_p11 = scmp.lt.u32.totalorder %s631_s21, %s836_s5 }
  0x38   :  { %p637_p12 = pnand %p635_p11, %p632_p10 }
  0x3a   :  { %640 = shalt.err (!%p637_p12)
}
  0x3b   :  { %s641_s1 = scalar_lea.vmem %s60_s17, 2048  ;;  %p646_p0 = scmp.lt.s32.totalorder %s60_s17, %s60_s17 }
  0x3c   :  { %p642_p13 = scmp.ne.s32.totalorder %s60_s17, %s641_s1  ;;  %p647_p1 = scmp.lt.s32.totalorder %s641_s1, %s641_s1 }
  0x3e   :  { %p648_p2 = por %p647_p1, %p646_p0 }
  0x40   :  { %p649_p3 = pnand %p648_p2, %p642_p13 }
  0x42   :  { %652 = shalt.err (!%p649_p3)
}
  0x43   :  { %65 = dma.hbm_to_vmem [thread:$0]  %s836_s5, 2048, %s60_s17, [#allocation9], %s684_s11, %s684_s11, %s685_s12  }
  0x44   :  { %675 = dma.done.wait [#allocation3], 128  }
  0x45   :  { %676 = vsyncadd [#allocation3], 4294967168 }
  0x46   :  { %677 = dma.done.wait [#allocation6], 2304  }
  0x47   :  { %678 = vsyncadd [#allocation6], 4294964992 }
  0x48   :  { %679 = dma.done.wait [#allocation9], 2048  }
  0x49   :  { %680 = vsyncadd [#allocation9], 4294965248  ;;  %v689_v0 = vmov 0.0|0.0   ;;  %vm690_vm0 = vmmov 0   ;;  %v691_v1 = vmov 0.0   ;;  %v81_v2 = vld [vmem:[#allocation5] sm:$0xff] }
  0x4a   :  { %500 = vmatprep.subr.bf16.mxu0 %v689_v0  ;;  %427 = vmatprep.mubr.msk.f32.mxu0 %vm690_vm0, %v691_v1  ;;  %v82_v3 = vld [vmem:[#allocation5 + $0x8] sm:$0xff]  ;;  %v170_v5 = vld [vmem:[#allocation7] sm:$0xff]  ;;  %v171_v6 = vld [vmem:[#allocation7 + $0x8] sm:$0xff]  ;;  %vm90_vm1 = vcmask 130048   ;;  %s692_s28 = smov [#allocation10]  }
  0x4b   :  { %503 = vmatprep.subr.bf16.mxu1 %v689_v0  ;;  %462 = vmatprep.mubr.msk.f32.mxu1 %vm690_vm0, %v691_v1  ;;  %v501_v4 = vpack.c.bf16 %v82_v3, %v81_v2  ;;  %v172_v7 = vld [vmem:[#allocation7 + $0x10] sm:$0xff]  ;;  %v504_v8 = vpack.c.bf16 %v171_v6, %v170_v5  ;;  %v173_v9 = vld [vmem:[#allocation7 + $0x18] sm:$0xff]  ;;  %v80_v10 = vld [vmem:[#allocation2] sm:$0xff]  ;;  %s369_s29 = sshll.u32 %s692_s28, 4  ;;  %s370_s29 = int_to_ptr.vmem [resolvable:$true] %s369_s29 }
  0x4c   :  { %v507_v11 = vpack.c.bf16 %v173_v9, %v172_v7  ;;  %v174_v12 = vld [vmem:[#allocation7 + $0x20] sm:$0xff]  ;;  %v175_v13 = vld [vmem:[#allocation7 + $0x28] sm:$0xff]  ;;  %v176_v15 = vld [vmem:[#allocation7 + $0x30] sm:$0xff]  ;;  %p658_p5 = scmp.lt.s32.totalorder %s370_s29, %s370_s29 }
  0x4d   :  { %502 = vmatpush3.bf16.msra.mxu0 %v501_v4  ;;  %505 = vmatpush3.bf16.msra.mxu1 %v504_v8  ;;  %v510_v14 = vpack.c.bf16 %v175_v13, %v174_v12  ;;  %v177_v16 = vld [vmem:[#allocation7 + $0x38] sm:$0xff]  ;;  %v178_v18 = vld [vmem:[#allocation7 + $0x40] sm:$0xff]  ;;  %v179_v19 = vld [vmem:[#allocation7 + $0x48] sm:$0xff] }
  0x4e   :  { %527 = vmatprep.subr.bf16.mxu0 %v689_v0  ;;  %506 = vmatprep.subr.bf16.mxu1 %v689_v0  ;;  %v513_v17 = vpack.c.bf16 %v177_v16, %v176_v15  ;;  %v516_v20 = vpack.c.bf16 %v179_v19, %v178_v18  ;;  %v180_v21 = vld [vmem:[#allocation7 + $0x50] sm:$0xff]  ;;  %v181_v22 = vld [vmem:[#allocation7 + $0x58] sm:$0xff]  ;;  %v182_v23 = vld [vmem:[#allocation7 + $0x60] sm:$0xff] }
  0x4f   :  { %v519_v24 = vpack.c.bf16 %v181_v22, %v180_v21  ;;  %v183_v25 = vld [vmem:[#allocation7 + $0x68] sm:$0xff]  ;;  %v184_v27 = vld [vmem:[#allocation7 + $0x70] sm:$0xff]  ;;  %v185_v28 = vld [vmem:[#allocation7 + $0x78] sm:$0xff] }
  0x50   :  { %428 = vmatmul.mubr.msk.f32.vlgmr.msra.gmra.mrb[0].mxu0 %vm90_vm1, %v80_v10  ;;  %v522_v26 = vpack.c.bf16 %v183_v25, %v182_v23  ;;  %v525_v29 = vpack.c.bf16 %v185_v28, %v184_v27  ;;  %v269_v30 = vld [vmem:[#allocation8] sm:$0xff]  ;;  %v270_v31 = vld [vmem:[#allocation8 + $0x8] sm:$0xff]  ;;  %v271_v32 = vld [vmem:[#allocation8 + $0x10] sm:$0xff] }
  0x51   :  { %497 = vmatprep.mubr.msk.f32.mxu0 %vm690_vm0, %v691_v1  ;;  %508 = vmatpush3.bf16.msra.mxu1 %v507_v11  ;;  %v528_v33 = vpack.c.bf16 %v270_v31, %v269_v30  ;;  %v272_v34 = vld [vmem:[#allocation8 + $0x18] sm:$0xff]  ;;  %v273_v36 = vld [vmem:[#allocation8 + $0x20] sm:$0xff]  ;;  %v274_v37 = vld [vmem:[#allocation8 + $0x28] sm:$0xff] }
  0x52   :  { %509 = vmatprep.subr.bf16.mxu1 %v689_v0  ;;  %v531_v35 = vpack.c.bf16 %v272_v34, %v271_v32  ;;  %v534_v38 = vpack.c.bf16 %v274_v37, %v273_v36  ;;  %v380_v39 = vld [vmem:[%s833_s2] ss:$0 sm:$0xff]  ;;  %v275_v48 = vld [vmem:[#allocation8 + $0x30] sm:$0xff]  ;;  %v276_v49 = vld [vmem:[#allocation8 + $0x38] sm:$0xff] }
  0x53   :  { %529 = vmatpush3.bf16.msra.mxu0 %v528_v33  ;;  %v537_v50 = vpack.c.bf16 %v276_v49, %v275_v48  ;;  %v277_v51 = vld [vmem:[#allocation8 + $0x40] sm:$0xff]  ;;  %v278_v52 = vld [vmem:[#allocation8 + $0x48] sm:$0xff]  ;;  %v279_v54 = vld [vmem:[#allocation8 + $0x50] sm:$0xff] }
  0x54   :  { %530 = vmatprep.subr.bf16.mxu0 %v689_v0  ;;  %v540_v53 = vpack.c.bf16 %v278_v52, %v277_v51  ;;  %v280_v55 = vld [vmem:[#allocation8 + $0x58] sm:$0xff]  ;;  %v281_v56 = vld [vmem:[#allocation8 + $0x60] sm:$0xff]  ;;  %v282_v58 = vld [vmem:[#allocation8 + $0x68] sm:$0xff] }
  0x55   :  { %511 = vmatpush3.bf16.msra.mxu1 %v510_v14  ;;  %v543_v57 = vpack.c.bf16 %v280_v55, %v279_v54  ;;  %v546_v59 = vpack.c.bf16 %v282_v58, %v281_v56  ;;  %v283_v60 = vld [vmem:[#allocation8 + $0x70] sm:$0xff]  ;;  %v284_v61 = vld [vmem:[#allocation8 + $0x78] sm:$0xff]  ;;  %v383_v63 = vld [vmem:[%s835_s4] ss:$0 sm:$0xff]  ;;  %s653_s4 = scalar_lea.vmem %s370_s29, 128 }
  0x56   :  { %512 = vmatprep.subr.bf16.mxu1 %v689_v0  ;;  %v549_v62 = vpack.c.bf16 %v284_v61, %v283_v60  ;;  %p654_p4 = scmp.ne.s32.totalorder %s370_s29, %s653_s4  ;;  %p659_p6 = scmp.lt.s32.totalorder %s653_s4, %s653_s4 }
  0x57   :  { %532 = vmatpush3.bf16.msra.mxu0 %v531_v35 }
  0x58   :  { %533 = vmatprep.subr.bf16.mxu0 %v689_v0  ;;  %p660_p7 = por %p659_p6, %p658_p5 }
  0x59   :  { %514 = vmatpush3.bf16.msra.mxu1 %v513_v17 }
  0x5a   :  { %515 = vmatprep.subr.bf16.mxu1 %v689_v0  ;;  %p661_p8 = pnand %p660_p7, %p654_p4 }
  0x5b   :  { %535 = vmatpush3.bf16.msra.mxu0 %v534_v38 }
  0x5c   :  { %536 = vmatprep.subr.bf16.mxu0 %v689_v0 }
  0x5d   :  { %517 = vmatpush3.bf16.msra.mxu1 %v516_v20 }
  0x5e   :  { %518 = vmatprep.subr.bf16.mxu1 %v689_v0 }
  0x5f   :  { %538 = vmatpush3.bf16.msra.mxu0 %v537_v50 }
  0x60   :  { %539 = vmatprep.subr.bf16.mxu0 %v689_v0 }
  0x61   :  { %520 = vmatpush3.bf16.msra.mxu1 %v519_v24 }
  0x62   :  { %521 = vmatprep.subr.bf16.mxu1 %v689_v0 }
  0x63   :  { %541 = vmatpush3.bf16.msra.mxu0 %v540_v53 }
  0x64   :  { %542 = vmatprep.subr.bf16.mxu0 %v689_v0 }
  0x65   :  { %523 = vmatpush3.bf16.msra.mxu1 %v522_v26 }
  0x66   :  { %524 = vmatprep.subr.bf16.mxu1 %v689_v0 }
  0x67   :  { %544 = vmatpush3.bf16.msra.mxu0 %v543_v57 }
  0x68   :  { %545 = vmatprep.subr.bf16.mxu0 %v689_v0 }
  0x69   :  { %526 = vmatpush3.bf16.msra.mxu1 %v525_v29 }
  0x6b   :  { %547 = vmatpush3.bf16.msra.mxu0 %v546_v59 }
  0x6c   :  { %548 = vmatprep.subr.bf16.mxu0 %v689_v0  ;;  %v385_v0 = vld [vmem:[%s837_s6] ss:$0 sm:$0xff] }
  0x6f   :  { %550 = vmatpush3.bf16.msra.mxu0 %v549_v62 }
 0x123   :  { %v160_v40 = vpop.f32.mrb[0].mxu0 }
 0x124   :  { %v161_v41 = vadd.f32 %v380_v39, %v160_v40  ;;  %v429_v42 = vpop.f32.mrb[1].mxu0 }
 0x126   :  { %v165_v43 = vmin.f32 %v161_v41, 0.0  ;;  %vm164_vm2 = vcmp.gt.f32.partialorder %v161_v41, 0.0 }
 0x128   :  { %v166_v44 = vmul.f32 1.442695, %v165_v43 }
 0x12a   :  { %561 = vpow2.f32 %v166_v44 }
 0x134   :  { %v562_v45 = vpop.eup %561 }
 0x135   :  { %v382_v46 = vadd.f32 -1.0, %v562_v45 }
 0x137   :  { %v169_v47 = vsel %vm164_vm2, %v161_v41, %v382_v46 }
 0x138   :  { %463 = vmatmul.mubr.f32.vlgmr.msra.gmra.mrb[0].mxu1 %v169_v47 }
 0x20b   :  { %v259_v1 = vpop.f32.mrb[0].mxu1 }
 0x20c   :  { %v260_v2 = vadd.f32 %v383_v63, %v259_v1  ;;  %v464_v3 = vpop.f32.mrb[1].mxu1 }
 0x20e   :  { %v264_v4 = vmin.f32 %v260_v2, 0.0  ;;  %vm263_vm3 = vcmp.gt.f32.partialorder %v260_v2, 0.0 }
 0x210   :  { %v265_v5 = vmul.f32 1.442695, %v264_v4 }
 0x212   :  { %563 = vpow2.f32 %v265_v5 }
 0x21c   :  { %v564_v6 = vpop.eup %563 }
 0x21d   :  { %v384_v7 = vadd.f32 -1.0, %v564_v6 }
 0x21f   :  { %v268_v8 = vsel %vm263_vm3, %v260_v2, %v384_v7 }
 0x220   :  { %498 = vmatmul.mubr.f32.vlgmr.msra.gmra.mrb[2].mxu0 %v268_v8 }
 0x2f3   :  { %v358_v9 = vpop.f32.mrb[2].mxu0 }
 0x2f4   :  { %v359_v10 = vadd.f32 %v385_v0, %v358_v9  ;;  %v499_v11 = vpop.f32.mrb[3].mxu0 }
 0x2f6   :  { %362 = vst [vmem:[#allocation10] sm:$0xff] %v359_v10 }
 0x2f7   :  { %664 = shalt.err (!%p661_p8)
}
 0x2f8   :  { %s665_s9 = scalar_lea.hbm %s838_s7, 128 }
 0x2f9   :  { %p666_p9 = scmp.ne.s32.totalorder %s838_s7, %s665_s9  ;;  %p669_p10 = scmp.lt.u32.totalorder %s665_s9, %s838_s7 }
 0x2fb   :  { %p671_p11 = pnand %p669_p10, %p666_p9 }
 0x2fd   :  { %674 = shalt.err (!%p671_p11)
}
 0x2fe   :  { %372 = dma.vmem_to_hbm [thread:$0]  %s370_s29, 128, %s838_s7, [#allocation4]  }
 0x2ff   :  { %681 = dma.done.wait [#allocation4], 128  }
 0x300   :  { %682 = vsyncadd [#allocation4], 4294967168 }
 0x301   :  { %376 = vsyncpa [#allocation3], 1 }
 0x302   :  { %377 = vsyncpa [#allocation6], 1 }
 0x303   :  { %378 = vsyncpa [#allocation9], 1 }
 0x304   :  { %379 = vsyncpa [#allocation4], 1 }

</bundles_post_ra>
